<compile_context>
chip_gen: v5e
topology: v5e:2x2
jax: 0.10.0
libtpu: 0.0.40
codegen_flags: <defaults>
</compile_context>

<pallas_src>
import math

import jax
import jax.numpy as jnp
import numpy as np
from jax.experimental import pallas as pl
from jax.experimental.pallas import tpu as pltpu


def _piecewise_encoding_kernel(x_ref, w_ref, b_ref, o_ref):
    # u = ((x + 1) @ freq_interleaved + interleave(0, 1)) / 2
    # ("+1", interleave and the 1/2 pre-scale are folded into w_ref / b_ref.)
    xv = x_ref[...]
    if xv.dtype != jnp.float32:
        xv = xv.astype(jnp.float32)          # in-kernel upcast for bf16/f16 x
    u = jnp.dot(xv, w_ref[...], preferred_element_type=jnp.float32)
    u = u + b_ref[...]
    # trunc(u) via round-toward-zero int32 convert (exact for |u| < 2^31).
    q = u.astype(jnp.int32).astype(jnp.float32)
    # Original:  v = fmod(2u, 2) - 1 ; out = where(v<0, 2v+1, 1-2v) = 1 - 2|v|
    # which, with u = t/2, is exactly  1 - 4*|u - trunc(u) - 0.5|.
    o_ref[...] = (1.0 - 4.0 * jnp.abs(u - q - 0.5)).astype(o_ref.dtype)


def piecewise_encoding(x, frequencies, *, target_block_bytes=4 << 20,
                       out_dtype=None):
    """Pallas implementation of PieceWiseEncoding.forward.

    x:           (..., domain_dim) array
    frequencies: (domain_dim, num_frequencies) buffer
    out_dtype:   output dtype (default: promote(x.dtype, f32)).  Pass
                 jnp.bfloat16 to halve store traffic if downstream tolerates it.
    returns:     (..., 2 * num_frequencies)
    """
    frequencies = jnp.asarray(frequencies, jnp.float32)
    domain_dim, num_freq = frequencies.shape
    C = 2 * num_freq
    lead = x.shape[:-1]
    if out_dtype is None:
        out_dtype = jnp.promote_types(x.dtype, jnp.float32)
    out_dtype = jnp.dtype(out_dtype)

    x2 = x.reshape(-1, domain_dim)
    if x2.dtype not in (jnp.float32, jnp.bfloat16, jnp.float16):
        x2 = x2.astype(jnp.float32)          # ints / f64 -> f32; floats stay native
    n = x2.shape[0]
    if n == 0:
        return jnp.zeros((*lead, C), out_dtype)

    # ---- fold "+1", the (out, out+1) interleave and the 1/2 pre-scale -------
    #   W2[:, 2k] = W2[:, 2k+1] = freq[:, k] / 2
    #   b2[2k]    =  sum_d freq[d, k] / 2            (the "+1" on x)
    #   b2[2k+1]  = (sum_d freq[d, k] + 1) / 2       (the interleaved "out+1")
    w2 = 0.5 * jnp.repeat(frequencies, 2, axis=1)                     # (D, C)
    b2 = 0.5 * (jnp.repeat(jnp.sum(frequencies, axis=0), 2)
                + jnp.tile(jnp.array([0.0, 1.0], jnp.float32), num_freq))

    # ---- row grouping: keep the output last dim a multiple of 128 lanes -----
    # Never fall back to lane-sparse stores: pad x with up to G-1 zero rows so
    # the grouped reshape is always legal (input traffic is only ~D/C of the
    # output; losing lane density costs ~4x on this store-bound kernel).
    G = 128 // math.gcd(C, 128)              # smallest G with (G*C) % 128 == 0
    pad = (-n) % G
    if pad:
        x2 = jnp.pad(x2, ((0, pad), (0, 0)))
    n_pad = n + pad
    n_g = n_pad // G
    K, Cg = G * domain_dim, G * C

    if G > 1:
        # NOTE: the block-diagonal weight inflates the contraction by G
        # (K = G*D, G can reach 64 for 2F not a multiple of 8).  The MXU has
        # huge slack here and the kernel stays HBM-store-bound; re-check the
        # MXU only if 2F ever becomes very wide.  Do NOT move this onto the
        # VPU — the VALU is the near-critical slot.
        wg = jnp.kron(jnp.eye(G, dtype=jnp.float32), w2)              # (K, Cg)
        xg = x2.reshape(n_g, K)                                       # free reshape
        bg = jnp.tile(b2, G).reshape(1, Cg)
    else:
        wg, xg, bg = w2, x2, b2.reshape(1, C)

    # ---- row tiling ----------------------------------------------------------
    align = 16 if out_dtype.itemsize < 4 else 8      # bf16 packs 16 sublanes
    min_steps = 8                                    # >=3-4 steps per v7x core
    rows_for_target = max(align, target_block_bytes // (Cg * out_dtype.itemsize))
    tn = min(rows_for_target, max(512, pl.cdiv(n_g, min_steps)))
    tn = max(align, (min(tn, n_g) // align) * align)
    if tn >= n_g:
        if n_g >= 2 * align:
            # split the single-block case so both v7x TensorCores get work
            tn = max(align, (pl.cdiv(n_g, 2) // align) * align)
        else:
            tn = n_g                          # one (possibly unaligned) block

    grid = (pl.cdiv(n_g, tn),)

    # Double-buffered VMEM footprint; only override the scoped limit (16 MiB on
    # v5e, 32 MiB on v6e/v7x) if a caller asks for much bigger tiles.
    footprint = 2 * (tn * Cg * out_dtype.itemsize
                     + tn * K * xg.dtype.itemsize
                     + K * Cg * 4 + Cg * 4)
    vmem_limit = None if footprint <= (12 << 20) else int(footprint + (4 << 20))

    out = pl.pallas_call(
        _piecewise_encoding_kernel,
        out_shape=jax.ShapeDtypeStruct((n_g, Cg), out_dtype),
        grid=grid,
        in_specs=[
            pl.BlockSpec((tn, K), lambda i: (i, 0)),
            pl.BlockSpec((K, Cg), lambda i: (0, 0)),
            pl.BlockSpec((1, Cg), lambda i: (0, 0)),
        ],
        # NOTE: the ragged last grid block computes on OOB-read (padded) rows
        # and relies on write clipping.  Do not add output read-back or
        # input_output_aliases here without revisiting that assumption.
        out_specs=pl.BlockSpec((tn, Cg), lambda i: (i, 0)),
        compiler_params=pltpu.CompilerParams(
            dimension_semantics=("parallel",),
            vmem_limit_bytes=vmem_limit),
    )(xg, wg, bg)

    out = out.reshape(n_pad, C)
    if pad:
        # Only in the ragged case; inputs with n % G == 0 take the copy-free path.
        out = out[:n]
    return out.reshape(*lead, C)


def _reference(x, frequencies):
    """Pure-JAX transcription of the PyTorch forward (for validation)."""
    domain_dim, num_freq = frequencies.shape
    lead = x.shape[:-1]
    x2 = x.reshape(-1, domain_dim).astype(jnp.float32)
    out = (x2 + 1.0) @ frequencies                          # (N, F)
    out = jnp.stack((out, out + 1.0), axis=2).reshape(-1, 2 * num_freq)
    out = jnp.fmod(out, 2.0) - 1.0
    out = jnp.where(out < 0.0, 2.0 * out + 1.0, 1.0 - 2.0 * out)
    return out.reshape(*lead, 2 * num_freq)


if __name__ == "__main__":
    domain_dim = 4
    num_frequencies = 16
    std = 0.5

    key = jax.random.PRNGKey(0)
    k_freq, k_x, k_xr, k_xb = jax.random.split(key, 4)
    frequencies = std * jax.random.normal(
        k_freq, (domain_dim, num_frequencies), dtype=jnp.float32)

    # 1) Exact-group / copy-free path: N = 2*16 = 32 rows (divisible by G = 4).
    x = jax.random.normal(k_x, (2, 16, domain_dim), dtype=jnp.float32)
    out = jax.block_until_ready(piecewise_encoding(x, frequencies))
    assert out.shape == (2, 16, 2 * num_frequencies), out.shape
    np.testing.assert_allclose(np.asarray(out),
                               np.asarray(_reference(x, frequencies)),
                               rtol=1e-4, atol=1e-4)

    # 2) Ragged path: N = 3*11 = 33 -> padded to 36, still lane-dense stores.
    x_r = jax.random.normal(k_xr, (3, 11, domain_dim), dtype=jnp.float32)
    out_r = jax.block_until_ready(piecewise_encoding(x_r, frequencies))
    assert out_r.shape == (3, 11, 2 * num_frequencies), out_r.shape
    np.testing.assert_allclose(np.asarray(out_r),
                               np.asarray(_reference(x_r, frequencies)),
                               rtol=1e-4, atol=1e-4)

    # 3) bf16 output (halved store traffic) + multi-block grid: N = 4*64 = 256.
    x_b = jax.random.normal(k_xb, (4, 64, domain_dim), dtype=jnp.float32)
    out_b = jax.block_until_ready(
        piecewise_encoding(x_b, frequencies, out_dtype=jnp.bfloat16))
    assert out_b.shape == (4, 64, 2 * num_frequencies), out_b.shape
    np.testing.assert_allclose(np.asarray(out_b).astype(np.float32),
                               np.asarray(_reference(x_b, frequencies)),
                               rtol=0.0, atol=2e-2)

    print("KERNEL_OK")
</pallas_src>

<mosaic_0001>
module attributes {stable_mosaic.version = 11 : i64} {
  func.func @_piecewise_encoding_kernel(%arg0: i32, %arg1: memref<8x16xf32, #tpu.memory_space<vmem>>, %arg2: memref<16x128xf32, #tpu.memory_space<vmem>>, %arg3: memref<1x128xf32, #tpu.memory_space<vmem>>, %arg4: memref<8x128xf32, #tpu.memory_space<vmem>>) attributes {dimension_semantics = [#tpu.dimension_semantics<parallel>], iteration_bounds = array<i64: 1>, scalar_prefetch = 0 : i64, scratch_operands = 0 : i64, tpu.core_type = #tpu.core_type<tc>, window_params = [{transform_indices = @transform_0, window_bounds = array<i64: 8, 16>}, {pipeline_mode = #tpu.pipeline_mode<synchronous>, transform_indices = @transform_1, window_bounds = array<i64: 16, 128>}, {pipeline_mode = #tpu.pipeline_mode<synchronous>, transform_indices = @transform_2, window_bounds = array<i64: 1, 128>}, {transform_indices = @transform_3, window_bounds = array<i64: 8, 128>}]} {
    %c0 = arith.constant 0 : index
    %c0_0 = arith.constant 0 : index
    %0 = vector.load %arg1[%c0, %c0_0] : memref<8x16xf32, #tpu.memory_space<vmem>>, vector<8x16xf32>
    %c0_1 = arith.constant 0 : index
    %c0_2 = arith.constant 0 : index
    %1 = vector.load %arg2[%c0_1, %c0_2] : memref<16x128xf32, #tpu.memory_space<vmem>>, vector<16x128xf32>
    %cst = arith.constant dense<0.000000e+00> : vector<8x128xf32>
    %2 = tpu.matmul %0, %1, %cst {dimension_numbers = #tpu.dot_dimension_numbers<[1], [0], [0], [1], [0, 0, 1, 1], [], []>} : vector<8x16xf32>, vector<16x128xf32>, vector<8x128xf32> -> vector<8x128xf32>
    %c0_3 = arith.constant 0 : index
    %c0_4 = arith.constant 0 : index
    %3 = vector.load %arg3[%c0_3, %c0_4] : memref<1x128xf32, #tpu.memory_space<vmem>>, vector<1x128xf32>
    %4 = vector.broadcast %3 : vector<1x128xf32> to vector<8x128xf32>
    %5 = arith.addf %2, %4 : vector<8x128xf32>
    %6 = arith.fptosi %5 : vector<8x128xf32> to vector<8x128xi32>
    %7 = arith.sitofp %6 : vector<8x128xi32> to vector<8x128xf32>
    %8 = arith.subf %5, %7 : vector<8x128xf32>
    %cst_5 = arith.constant 5.000000e-01 : f32
    %9 = vector.broadcast %cst_5 : f32 to vector<8x128xf32>
    %10 = arith.subf %8, %9 : vector<8x128xf32>
    %11 = math.absf %10 : vector<8x128xf32>
    %cst_6 = arith.constant 4.000000e+00 : f32
    %12 = vector.broadcast %cst_6 : f32 to vector<8x128xf32>
    %13 = arith.mulf %12, %11 : vector<8x128xf32>
    %cst_7 = arith.constant 1.000000e+00 : f32
    %14 = vector.broadcast %cst_7 : f32 to vector<8x128xf32>
    %15 = arith.subf %14, %13 : vector<8x128xf32>
    %c0_8 = arith.constant 0 : index
    %c0_9 = arith.constant 0 : index
    %16 = vector.load %arg4[%c0_8, %c0_9] : memref<8x128xf32, #tpu.memory_space<vmem>>, vector<8x128xf32>
    tpu.vector_store %arg4[%c0_8, %c0_9], %15 {strides = array<i32>} : memref<8x128xf32, #tpu.memory_space<vmem>>, vector<8x128xf32>,
    return
  }
  func.func @transform_0(%arg0: i32) -> (i32, i32) {
    %c0_i32 = arith.constant 0 : i32
    %c0_i32_0 = arith.constant 0 : i32
    return %arg0, %c0_i32 : i32, i32
  }
  func.func @transform_1(%arg0: i32) -> (i32, i32) {
    %c0_i32 = arith.constant 0 : i32
    %c0_i32_0 = arith.constant 0 : i32
    %c0_i32_1 = arith.constant 0 : i32
    return %c0_i32, %c0_i32_0 : i32, i32
  }
  func.func @transform_2(%arg0: i32) -> (i32, i32) {
    %c0_i32 = arith.constant 0 : i32
    %c0_i32_0 = arith.constant 0 : i32
    %c0_i32_1 = arith.constant 0 : i32
    return %c0_i32, %c0_i32_0 : i32, i32
  }
  func.func @transform_3(%arg0: i32) -> (i32, i32) {
    %c0_i32 = arith.constant 0 : i32
    %c0_i32_0 = arith.constant 0 : i32
    return %arg0, %c0_i32 : i32, i32
  }
}

</mosaic_0001>

<bundles_post_ra>
// kernel: tpu_custom_call.1
= control target key start
LH: loop header
LB: loop body
LE: loop exit
PB: predicated region body
PF: predicated region fallthrough
CT: control target
= control target key end

     0   :  { %8 = vsyncpa [#allocation3], 0  ;;  %s230_s0 = inlined_call_operand.hbm [shape: f32[8,16], index: 0, kind: input, shape index: {}]   ;;  %s231_s1 = inlined_call_operand.hbm [shape: f32[16,128], index: 1, kind: input, shape index: {}]   ;;  %s232_s2 = inlined_call_operand.vmem [shape: f32[1,128], index: 2, kind: input, shape index: {}]   ;;  %s233_s3 = inlined_call_operand.hbm [shape: f32[8,128], index: 3, kind: output, shape index: {}]  }
   0x1   :  { %9 = vsyncpa [#allocation6], 0 }
   0x2   :  { %10 = vsyncpa [#allocation4], 0  ;;  %s16_s14 = sshll.u32 %s230_s0, 4  ;;  %s193_s15 = smov [#allocation2]   ;;  %s17_s14 = int_to_ptr.hbm [resolvable:$true] %s16_s14 }
   0x3   :  { %s18_s16 = sshll.u32 %s193_s15, 4  ;;  %s26_s19 = sshll.u32 %s231_s1, 4  ;;  %s19_s16 = int_to_ptr.vmem [resolvable:$true] %s18_s16  ;;  %s27_s19 = int_to_ptr.hbm [resolvable:$true] %s26_s19 }
   0x4   :  { %21 = dma.hbm_to_vmem [thread:$0]  %s17_s14, 128, %s19_s16, [#allocation3]  }
   0x5   :  { %s194_s20 = smov [#allocation5]   ;;  %s195_s22 = smov 128  }
   0x6   :  { %s28_s21 = sshll.u32 %s194_s20, 4  ;;  %s196_s23 = smov 8   ;;  %s29_s21 = int_to_ptr.vmem [resolvable:$true] %s28_s21 }
   0x7   :  { %34 = dma.hbm_to_vmem [thread:$0]  %s27_s19, 256, %s29_s21, [#allocation6], %s195_s22, %s195_s22, %s196_s23  }
   0x8   :  { %187 = dma.done.wait [#allocation3], 128  }
   0x9   :  { %188 = vsyncadd [#allocation3], 4294967168 }
   0xa   :  { %189 = dma.done.wait [#allocation6], 256  }
   0xb   :  { %190 = vsyncadd [#allocation6], 4294967040  ;;  %v47_v0 = vld [vmem:[#allocation5 + $0x8] sm:$0xff]  ;;  %v46_v1 = vld [vmem:[#allocation5] sm:$0xff]  ;;  %vm52_vm0 = vcmask 130048   ;;  %s197_s24 = smov [#allocation7]  }
   0xc   :  { %70 = vmatpush.msra.mxu0 %v47_v0  ;;  %v45_v2 = vld [vmem:[#allocation2] sm:$0xff]  ;;  %s89_s25 = sshll.u32 %s197_s24, 4  ;;  %s91_s28 = sshll.u32 %s233_s3, 4  ;;  %s90_s25 = int_to_ptr.vmem [resolvable:$true] %s89_s25  ;;  %s92_s28 = int_to_ptr.hbm [resolvable:$true] %s91_s28 }
   0xd   :  { %v114_v3 = vld [vmem:[%s232_s2] ss:$0 sm:$0xff] }
   0xe   :  { %71 = vmatpush.msra.mxu0 %v46_v1 }
   0xf   :  { %102 = vmatmul.msk.f32.vlgmr.msra.gmra.mxu0 %vm52_vm0, %v45_v2 }
  0x8c   :  { %v73_v4 = vpop.f32.mrf.mxu0 }
  0x8d   :  { %v74_v5 = vadd.f32 %v114_v3, %v73_v4 }
  0x8f   :  { %vm104_vm1 = vcmp.lt.s32.totalorder %v74_v5, 0  ;;  %v105_v6 = vceil.f32 %v74_v5  ;;  %v106_v7 = vfloor.f32 %v74_v5 }
  0x91   :  { %v107_v8 = vsel %vm104_vm1, %v105_v6, %v106_v7 }
  0x92   :  { %v108_v9 = vcvt.f32.s32 %v107_v8 }
  0x94   :  { %v77_v10 = vcvt.s32.f32 %v108_v9 }
  0x96   :  { %v78_v11 = vsub.f32 %v74_v5, %v77_v10 }
  0x98   :  { %v103_v12 = vadd.f32 -0.5, %v78_v11 }
  0x9a   :  { %v80_v13 = vand.u32 2147483647, %v103_v12 }
  0x9c   :  { %v81_v14 = vmul.f32 4.0, %v80_v13 }
  0x9e   :  { %v82_v15 = vsub.f32 1.0, %v81_v14 }
  0xa0   :  { %83 = vst [vmem:[#allocation7] sm:$0xff] %v82_v15 }
  0xa1   :  { %94 = dma.vmem_to_hbm [thread:$0]  %s90_s25, 128, %s92_s28, [#allocation4]  }
  0xa2   :  { %191 = dma.done.wait [#allocation4], 128  }
  0xa3   :  { %192 = vsyncadd [#allocation4], 4294967168 }
  0xa4   :  { %99 = vsyncpa [#allocation3], 1 }
  0xa5   :  { %100 = vsyncpa [#allocation6], 1 }
  0xa6   :  { %101 = vsyncpa [#allocation4], 1 }

</bundles_post_ra>
